<compile_context>
chip_gen: v7x
topology: tpu7x:2x2x1
jax: 0.10.0
libtpu: 0.0.40
codegen_flags: <defaults>
</compile_context>

<pallas_src>
import functools

import jax
import jax.numpy as jnp
from jax.experimental import pallas as pl
from jax.experimental.pallas import tpu as pltpu


# ----------------------------------------------------------------------------
# Single-pass kernel: whole (Bt, C, HW) slab resident in VMEM.
# ----------------------------------------------------------------------------
def _channel_attention_kernel(x_ref, w1t_ref, b1_ref, w2t_ref, b2_ref, o_ref, *, inv_hw):
    # AdaptiveAvgPool2d(1): reduce over the (logical) spatial lane axis with f32
    # accumulation; Mosaic masks the padded lanes of the final vreg tile, so this
    # is exact for HW that is not a multiple of 128. No f32 copy of the block is
    # materialized (dtype= accumulation, not an explicit astype of the block).
    pooled = jnp.sum(x_ref[...], axis=-1, dtype=jnp.float32) * inv_hw       # (Bt, C)

    # Conv2d(C -> C//r, 1): pooled @ w1^T, with w1 pre-transposed to (C, C_r).
    h = jnp.dot(pooled, w1t_ref[...],
                preferred_element_type=jnp.float32) + b1_ref[...]           # (Bt, C_r)
    h = jnp.maximum(h, 0.0)                                                 # ReLU

    # Conv2d(C//r -> C, 1): h @ w2^T, with w2 pre-transposed to (C_r, C).
    a = jnp.dot(h, w2t_ref[...],
                preferred_element_type=jnp.float32) + b2_ref[...]           # (Bt, C)
    attn = jax.nn.sigmoid(a).astype(o_ref.dtype)                            # (Bt, C)

    # out = x * attn (broadcast over spatial). Re-index x_ref (already in VMEM)
    # instead of keeping the first read live across the matmuls.
    o_ref[...] = (x_ref[...] * attn[:, :, None]).astype(o_ref.dtype)


# ----------------------------------------------------------------------------
# Two-pass fallback kernels (feature map too large for a whole-slab block).
# ----------------------------------------------------------------------------
def _pool_attn_kernel(x_ref, w1t_ref, b1_ref, w2t_ref, b2_ref, attn_ref, acc_ref,
                      *, inv_hw, hw, hw_tile):
    t = pl.program_id(1)

    @pl.when(t == 0)
    def _():
        acc_ref[...] = jnp.zeros_like(acc_ref)

    x = x_ref[...]                                                   # (1, C, hw_tile)
    if hw % hw_tile:
        # Edge-block padding contents are unspecified: mask lanes past HW.
        pos = jax.lax.broadcasted_iota(jnp.int32, x.shape, 2) + t * hw_tile
        x = jnp.where(pos < hw, x, jnp.zeros_like(x))
    acc_ref[...] += jnp.sum(x, axis=-1, dtype=jnp.float32)           # (1, C)

    @pl.when(t == pl.num_programs(1) - 1)
    def _():
        pooled = acc_ref[...] * inv_hw                               # (1, C)
        h = jnp.maximum(
            jnp.dot(pooled, w1t_ref[...],
                    preferred_element_type=jnp.float32) + b1_ref[...], 0.0)
        a = jnp.dot(h, w2t_ref[...],
                    preferred_element_type=jnp.float32) + b2_ref[...]  # (1, C)
        attn_ref[...] = jax.nn.sigmoid(a).reshape(1, -1, 1)          # (1, C, 1)


def _apply_attn_kernel(x_ref, attn_ref, o_ref):
    attn = attn_ref[...].astype(x_ref.dtype)                         # (1, C, 1)
    o_ref[...] = (x_ref[...] * attn).astype(o_ref.dtype)


# ----------------------------------------------------------------------------
# Wrappers
# ----------------------------------------------------------------------------
def _vmem_capacity_bytes(default=64 << 20):
    """Per-core VMEM capacity; conservative (v7x-safe) default if unavailable."""
    try:
        return int(pltpu.get_tpu_info().vmem_capacity_bytes)
    except Exception:
        return default


def _channel_attention_two_pass(x_flat, w1t, b1_row, w2t, b2_row, *, budget, capacity):
    """Spatially tiled fallback: pass 1 pooling+attn weights, pass 2 multiply."""
    B, C, HW = x_flat.shape
    C_r = w1t.shape[1]
    itemsize = x_flat.dtype.itemsize

    # Largest multiple-of-128 spatial tile whose (double-buffered) in+out blocks
    # plus the tiny resident operands fit the budget.
    hw_tile = max(128, (budget // (6 * C * itemsize)) // 128 * 128)
    hw_tile = min(hw_tile, ((HW + 127) // 128) * 128)
    n_t = pl.cdiv(HW, hw_tile)

    vmem_limit = int(min(max(6 * C * hw_tile * itemsize + (4 << 20), 16 << 20),
                         capacity - (8 << 20)))

    pool_kernel = functools.partial(
        _pool_attn_kernel, inv_hw=1.0 / HW, hw=HW, hw_tile=hw_tile)

    attn = pl.pallas_call(
        pool_kernel,
        out_shape=jax.ShapeDtypeStruct((B, C, 1), jnp.float32),
        grid_spec=pltpu.PrefetchScalarGridSpec(
            num_scalar_prefetch=0,
            grid=(B, n_t),
            in_specs=[
                pl.BlockSpec((1, C, hw_tile), lambda b, t: (b, 0, t)),   # x tile
                pl.BlockSpec((C, C_r), lambda b, t: (0, 0)),             # w1^T (resident)
                pl.BlockSpec((1, C_r), lambda b, t: (0, 0)),             # b1
                pl.BlockSpec((C_r, C), lambda b, t: (0, 0)),             # w2^T (resident)
                pl.BlockSpec((1, C), lambda b, t: (0, 0)),               # b2
            ],
            out_specs=pl.BlockSpec((1, C, 1), lambda b, t: (b, 0, 0)),
            scratch_shapes=[pltpu.VMEM((1, C), jnp.float32)],
        ),
        compiler_params=pltpu.CompilerParams(
            dimension_semantics=("parallel", "arbitrary"),
            vmem_limit_bytes=vmem_limit,
        ),
    )(x_flat, w1t, b1_row, w2t, b2_row)

    out_flat = pl.pallas_call(
        _apply_attn_kernel,
        out_shape=jax.ShapeDtypeStruct((B, C, HW), x_flat.dtype),
        grid_spec=pltpu.PrefetchScalarGridSpec(
            num_scalar_prefetch=0,
            grid=(B, n_t),
            in_specs=[
                pl.BlockSpec((1, C, hw_tile), lambda b, t: (b, 0, t)),   # x tile
                pl.BlockSpec((1, C, 1), lambda b, t: (b, 0, 0)),         # attn (resident)
            ],
            out_specs=pl.BlockSpec((1, C, hw_tile), lambda b, t: (b, 0, t)),
        ),
        compiler_params=pltpu.CompilerParams(
            dimension_semantics=("parallel", "parallel"),
            vmem_limit_bytes=vmem_limit,
        ),
    )(x_flat, attn)
    return out_flat


def channel_attention(x_nchw, w1, b1, w2, b2, *, vmem_budget_bytes=None):
    """x_nchw: (B, C, H, W); w1: (C_r, C); b1: (C_r,); w2: (C, C_r); b2: (C,)."""
    B, C, H, W = x_nchw.shape
    C_r = w1.shape[0]
    HW = H * W

    # No padding / slicing in the wrapper: the spatial block dim equals the full
    # array dim HW, so no extra HBM passes are added for HW % 128 != 0.
    x_flat = x_nchw.reshape(B, C, HW)

    # Generation-aware VMEM budget (4x = double-buffered in + out blocks).
    capacity = _vmem_capacity_bytes()
    if vmem_budget_bytes is None:
        budget = max(min((capacity * 3) // 4, capacity - (16 << 20)), 8 << 20)
    else:
        budget = min(int(vmem_budget_bytes), capacity - (16 << 20))

    # 1x1 conv weights as lane-dense dense matrices; both pre-transposed so the
    # kernel uses plain jnp.dot (no in-kernel XLU transpose).
    w1t = jnp.transpose(w1)            # (C, C_r)
    w2t = jnp.transpose(w2)            # (C_r, C)
    b1_row = b1.reshape(1, C_r)
    b2_row = b2.reshape(1, C)

    bytes_per_batch = C * HW * x_flat.dtype.itemsize
    feasible = [bt for bt in range(1, B + 1)
                if B % bt == 0 and 4 * bt * bytes_per_batch <= budget]

    if not feasible:
        # Even a single-batch slab does not fit: spatially tiled two-pass path.
        out_flat = _channel_attention_two_pass(
            x_flat, w1t, b1_row, w2t, b2_row, budget=budget, capacity=capacity)
        return out_flat.reshape(B, C, H, W)

    # Prefer an even number of grid steps (v7x megacore: 2 TCs share the grid
    # axis); otherwise take the largest slab that fits (fewest pipeline steps).
    even = [bt for bt in feasible if (B // bt) % 2 == 0]
    Bt = max(even) if even else max(feasible)
    grid_b = B // Bt

    block_bytes = Bt * bytes_per_batch
    vmem_limit = int(min(max(4 * block_bytes + (4 << 20), 16 << 20),
                         capacity - (8 << 20)))

    kernel = functools.partial(_channel_attention_kernel, inv_hw=1.0 / HW)

    out_flat = pl.pallas_call(
        kernel,
        out_shape=jax.ShapeDtypeStruct((B, C, HW), x_flat.dtype),
        grid_spec=pltpu.PrefetchScalarGridSpec(
            num_scalar_prefetch=0,
            grid=(grid_b,),
            in_specs=[
                pl.BlockSpec((Bt, C, HW), lambda i: (i, 0, 0)),   # x batch slab
                pl.BlockSpec((C, C_r), lambda i: (0, 0)),         # w1^T (resident)
                pl.BlockSpec((1, C_r), lambda i: (0, 0)),         # b1
                pl.BlockSpec((C_r, C), lambda i: (0, 0)),         # w2^T (resident)
                pl.BlockSpec((1, C), lambda i: (0, 0)),           # b2
            ],
            out_specs=pl.BlockSpec((Bt, C, HW), lambda i: (i, 0, 0)),
        ),
        compiler_params=pltpu.CompilerParams(
            dimension_semantics=("parallel",),
            vmem_limit_bytes=vmem_limit,
        ),
    )(x_flat, w1t, b1_row, w2t, b2_row)

    return out_flat.reshape(B, C, H, W)


def channel_attention_ref(x, w1, b1, w2, b2):
    """Pure-JAX reference matching the PyTorch module."""
    pooled = jnp.mean(x, axis=(2, 3))                               # (B, C)
    h = jnp.maximum(pooled @ w1.T + b1, 0.0)                        # (B, C_r)
    attn = jax.nn.sigmoid(h @ w2.T + b2)                            # (B, C)
    return x * attn[:, :, None, None]


if __name__ == "__main__":
    # Module defaults: in_channel=128, ratio=16 -> C_r=8. Small batch/spatial.
    B, C, ratio = 2, 128, 16
    C_r = C // ratio
    H = W = 16

    key = jax.random.PRNGKey(0)
    kx, k1, k2, k3, k4, kx2 = jax.random.split(key, 6)

    x = jax.random.normal(kx, (B, C, H, W), dtype=jnp.float32)
    w1 = jax.random.normal(k1, (C_r, C), dtype=jnp.float32) * (1.0 / jnp.sqrt(C))
    b1 = jax.random.normal(k2, (C_r,), dtype=jnp.float32) * 0.01
    w2 = jax.random.normal(k3, (C, C_r), dtype=jnp.float32) * (1.0 / jnp.sqrt(C_r))
    b2 = jax.random.normal(k4, (C,), dtype=jnp.float32) * 0.01

    # Single-pass path (HW multiple of 128).
    out = jax.block_until_ready(channel_attention(x, w1, b1, w2, b2))
    ref = channel_attention_ref(x, w1, b1, w2, b2)
    assert out.shape == (B, C, H, W)
    assert jnp.allclose(out, ref, atol=1e-5, rtol=1e-5), "mismatch vs reference (16x16)"

    # Non-multiple-of-128 spatial size: exercises the unpadded (no wrapper pad/slice) path.
    x2 = jax.random.normal(kx2, (B, C, 14, 14), dtype=jnp.float32)
    out2 = jax.block_until_ready(channel_attention(x2, w1, b1, w2, b2))
    ref2 = channel_attention_ref(x2, w1, b1, w2, b2)
    assert jnp.allclose(out2, ref2, atol=1e-5, rtol=1e-5), "mismatch vs reference (14x14)"

    # Force the spatially tiled two-pass fallback via a tiny VMEM budget.
    out3 = jax.block_until_ready(
        channel_attention(x, w1, b1, w2, b2, vmem_budget_bytes=256 << 10))
    assert jnp.allclose(out3, ref, atol=1e-5, rtol=1e-5), "mismatch vs reference (fallback)"

    print("KERNEL_OK")
</pallas_src>

<mosaic_0001>
module attributes {stable_mosaic.version = 11 : i64} {
  func.func @_channel_attention_kernel(%arg0: i32, %arg1: memref<1x128x256xf32, #tpu.memory_space<vmem>>, %arg2: memref<128x8xf32, #tpu.memory_space<vmem>>, %arg3: memref<1x8xf32, #tpu.memory_space<vmem>>, %arg4: memref<8x128xf32, #tpu.memory_space<vmem>>, %arg5: memref<1x128xf32, #tpu.memory_space<vmem>>, %arg6: memref<1x128x256xf32, #tpu.memory_space<vmem>>) attributes {dimension_semantics = [#tpu.dimension_semantics<parallel>], iteration_bounds = array<i64: 2>, scalar_prefetch = 0 : i64, scratch_operands = 0 : i64, tpu.core_type = #tpu.core_type<tc>, window_params = [{transform_indices = @transform_0, window_bounds = array<i64: 1, 128, 256>}, {pipeline_mode = #tpu.pipeline_mode<synchronous>, transform_indices = @transform_1, window_bounds = array<i64: 128, 8>}, {pipeline_mode = #tpu.pipeline_mode<synchronous>, transform_indices = @transform_2, window_bounds = array<i64: 1, 8>}, {pipeline_mode = #tpu.pipeline_mode<synchronous>, transform_indices = @transform_3, window_bounds = array<i64: 8, 128>}, {pipeline_mode = #tpu.pipeline_mode<synchronous>, transform_indices = @transform_4, window_bounds = array<i64: 1, 128>}, {transform_indices = @transform_5, window_bounds = array<i64: 1, 128, 256>}]} {
    %c0 = arith.constant 0 : index
    %c0_0 = arith.constant 0 : index
    %c0_1 = arith.constant 0 : index
    %0 = vector.load %arg1[%c0, %c0_0, %c0_1] : memref<1x128x256xf32, #tpu.memory_space<vmem>>, vector<1x128x256xf32>
    %cst = arith.constant dense<0.000000e+00> : vector<1x128xf32>
    %1 = vector.multi_reduction <add>, %0, %cst [2] : vector<1x128x256xf32> to vector<1x128xf32>
    %cst_2 = arith.constant 3.906250e-03 : f32
    %2 = vector.broadcast %cst_2 : f32 to vector<1x128xf32>
    %3 = arith.mulf %1, %2 : vector<1x128xf32>
    %c0_3 = arith.constant 0 : index
    %c0_4 = arith.constant 0 : index
    %4 = vector.load %arg2[%c0_3, %c0_4] : memref<128x8xf32, #tpu.memory_space<vmem>>, vector<128x8xf32>
    %cst_5 = arith.constant dense<0.000000e+00> : vector<1x8xf32>
    %5 = tpu.matmul %3, %4, %cst_5 {dimension_numbers = #tpu.dot_dimension_numbers<[1], [0], [0], [1], [0, 0, 1, 1], [], []>} : vector<1x128xf32>, vector<128x8xf32>, vector<1x8xf32> -> vector<1x8xf32>
    %c0_6 = arith.constant 0 : index
    %c0_7 = arith.constant 0 : index
    %6 = vector.load %arg3[%c0_6, %c0_7] : memref<1x8xf32, #tpu.memory_space<vmem>>, vector<1x8xf32>
    %7 = arith.addf %5, %6 : vector<1x8xf32>
    %cst_8 = arith.constant 0.000000e+00 : f32
    %8 = vector.broadcast %cst_8 : f32 to vector<1x8xf32>
    %9 = arith.maximumf %7, %8 : vector<1x8xf32>
    %c0_9 = arith.constant 0 : index
    %c0_10 = arith.constant 0 : index
    %10 = vector.load %arg4[%c0_9, %c0_10] : memref<8x128xf32, #tpu.memory_space<vmem>>, vector<8x128xf32>
    %cst_11 = arith.constant dense<0.000000e+00> : vector<1x128xf32>
    %11 = tpu.matmul %9, %10, %cst_11 {dimension_numbers = #tpu.dot_dimension_numbers<[1], [0], [0], [1], [0, 0, 1, 1], [], []>} : vector<1x8xf32>, vector<8x128xf32>, vector<1x128xf32> -> vector<1x128xf32>
    %c0_12 = arith.constant 0 : index
    %c0_13 = arith.constant 0 : index
    %12 = vector.load %arg5[%c0_12, %c0_13] : memref<1x128xf32, #tpu.memory_space<vmem>>, vector<1x128xf32>
    %13 = arith.addf %11, %12 : vector<1x128xf32>
    %14 = arith.negf %13 : vector<1x128xf32>
    %15 = math.exp %14 : vector<1x128xf32>
    %cst_14 = arith.constant 1.000000e+00 : f32
    %16 = vector.broadcast %cst_14 : f32 to vector<1x128xf32>
    %17 = arith.addf %16, %15 : vector<1x128xf32>
    %18 = arith.divf %16, %17 : vector<1x128xf32>
    %c0_15 = arith.constant 0 : index
    %c0_16 = arith.constant 0 : index
    %c0_17 = arith.constant 0 : index
    %19 = vector.load %arg1[%c0_15, %c0_16, %c0_17] : memref<1x128x256xf32, #tpu.memory_space<vmem>>, vector<1x128x256xf32>
    %20 = vector.shape_cast %18 : vector<1x128xf32> to vector<1x128x1xf32>
    %21 = vector.broadcast %20 : vector<1x128x1xf32> to vector<1x128x256xf32>
    %22 = arith.mulf %19, %21 : vector<1x128x256xf32>
    %c0_18 = arith.constant 0 : index
    %c0_19 = arith.constant 0 : index
    %c0_20 = arith.constant 0 : index
    %23 = vector.load %arg6[%c0_18, %c0_19, %c0_20] : memref<1x128x256xf32, #tpu.memory_space<vmem>>, vector<1x128x256xf32>
    tpu.vector_store %arg6[%c0_18, %c0_19, %c0_20], %22 {strides = array<i32>} : memref<1x128x256xf32, #tpu.memory_space<vmem>>, vector<1x128x256xf32>,
    return
  }
  func.func @transform_0(%arg0: i32) -> (i32, i32, i32) {
    %c0_i32 = arith.constant 0 : i32
    %c0_i32_0 = arith.constant 0 : i32
    %c0_i32_1 = arith.constant 0 : i32
    return %arg0, %c0_i32, %c0_i32_0 : i32, i32, i32
  }
  func.func @transform_1(%arg0: i32) -> (i32, i32) {
    %c0_i32 = arith.constant 0 : i32
    %c0_i32_0 = arith.constant 0 : i32
    %c0_i32_1 = arith.constant 0 : i32
    return %c0_i32, %c0_i32_0 : i32, i32
  }
  func.func @transform_2(%arg0: i32) -> (i32, i32) {
    %c0_i32 = arith.constant 0 : i32
    %c0_i32_0 = arith.constant 0 : i32
    %c0_i32_1 = arith.constant 0 : i32
    return %c0_i32, %c0_i32_0 : i32, i32
  }
  func.func @transform_3(%arg0: i32) -> (i32, i32) {
    %c0_i32 = arith.constant 0 : i32
    %c0_i32_0 = arith.constant 0 : i32
    %c0_i32_1 = arith.constant 0 : i32
    return %c0_i32, %c0_i32_0 : i32, i32
  }
  func.func @transform_4(%arg0: i32) -> (i32, i32) {
    %c0_i32 = arith.constant 0 : i32
    %c0_i32_0 = arith.constant 0 : i32
    %c0_i32_1 = arith.constant 0 : i32
    return %c0_i32, %c0_i32_0 : i32, i32
  }
  func.func @transform_5(%arg0: i32) -> (i32, i32, i32) {
    %c0_i32 = arith.constant 0 : i32
    %c0_i32_0 = arith.constant 0 : i32
    %c0_i32_1 = arith.constant 0 : i32
    return %arg0, %c0_i32, %c0_i32_0 : i32, i32, i32
  }
}

</mosaic_0001>

<bundles_post_ra>
// kernel: tpu_custom_call.1
= control target key start
LH: loop header
LB: loop body
LE: loop exit
PB: predicated region body
PF: predicated region fallthrough
CT: control target
= control target key end

     0   :  { %10 = vsyncpa [#allocation3], 0  ;;  %s1608_s0 = inlined_call_operand.hbm [shape: f32[2,128,256], index: 0, kind: input, shape index: {}]   ;;  %s1609_s1 = inlined_call_operand.vmem [shape: f32[128,8], index: 1, kind: input, shape index: {}]   ;;  %s1610_s2 = inlined_call_operand.vmem [shape: f32[1,8], index: 2, kind: input, shape index: {}]   ;;  %s1611_s3 = inlined_call_operand.vmem [shape: f32[8,128], index: 3, kind: input, shape index: {}]   ;;  %s1612_s4 = inlined_call_operand.vmem [shape: f32[1,128], index: 4, kind: input, shape index: {}]   ;;  %s1613_s5 = inlined_call_operand.hbm [shape: f32[2,128,256], index: 5, kind: output, shape index: {}]  }
   0x1   :  { %12 = vsyncpa [#allocation3 + $0x1], 0 }
   0x2   :  { %13 = vsyncpa [#allocation4], 0 }
   0x3   :  { %15 = vsyncpa [#allocation4 + $0x1], 0  ;;  %s1150_s18 = smov 0   ;;  %s1152_s19 = smov 0  }
   0x4   :  { %s1154_s20 = smov 0   ;;  %s1156_s21 = smov 0  }
   0x5 LB: > { %s1171_s22 = sadd.s32 4294967295, %s1109_s21   ;;  %s855_s23 = sadd.s32 4294967294, %s1109_s21   ;;  %s1109_s21 = sphi %s1156_s21, %s1626_s21   ;;  %s1105_s20 = sphi %s1154_s20, %s1625_s20   ;;  %s1101_s19 = sphi %s1152_s19, %s1624_s19   ;;  %s1097_s18 = sphi %s1150_s18, %s1623_s18  }
   0x6   : > { %s1175_s24 = sadd.s32 1, %s1109_s21   ;;  %s28_s25 = sadd.s32 1, %s1105_s20 }
   0x7   : > { %s25_s26 = ssub.s32 %s1109_s21, %s1175_s24  ;;  %p35_p0 = scmp.ne.s32.totalorder %s1105_s20, %s1101_s19 }
   0x8   : > { %p26_p1 = scmp.eq.s32.totalorder %s25_s26, 0  ;;  %p36_p2 = scmp.eq.s32.totalorder %s1109_s21, 0 }
   0x9   : > { %p41_p3 = scmp.ne.s32.totalorder %s1101_s19, %s1097_s18  ;;  %p42_p4 = scmp.eq.s32.totalorder %s1171_s22, 0 }
   0xa   : > { %s1187_s27 = scalar_select %p26_p1, %s1105_s20, %s28_s25  }
   0xb   : > { %p1189_p5 = por %p36_p2, %p35_p0  ;;  %p1193_p6 = por %p42_p4, %p41_p3 }
   0xc   : > { %p149_p7 = scmp.eq.s32.totalorder %s1171_s22, 1  ;;  %p155_p8 = scmp.eq.s32.totalorder %s855_s23, 1 }
   0xd   : > { %p968_p10 = scmp.lt.s32.totalorder %s1109_s21, 2  ;;  %s187_s7 = sand.u32 1, %s1105_s20  }
   0xe   : > { %p1200_p11 = por %p149_p7, %p35_p0  ;;  %p1204_p12 = por %p155_p8, %p41_p3 }
   0xf   : > { %s871_s8 = sshll.u32 %s1109_s21, 12  ;;  %s858_s9 = sshll.u32 %s187_s7, 8 }
  0x10   : > { %s1617_s30 = scalar_select %p1200_p11, 1, 0 }
  0x11   : > { %s1618_s6 = scalar_select %p1204_p12, 1, 0 }
  0x12   : > { %s1213_s12 = scalar_lea.hbm %s1608_s0, %s871_s8  ;;  %s191_s13 = scalar_lea.vmem [#allocation2], %s858_s9 }
  0x13   : > { %s198_s14 = sshll.u32 %s191_s13, 4  ;;  %p1217_p13 = pnand %p968_p10, %p1189_p5  ;;  %s1221_s14 = int_to_ptr.vmem [resolvable:$true] %s198_s14 }
  0x14   : > { %s1223_s16 = scalar_lea.sflag [#allocation3], %s187_s7  ;;  %s1013_s17 = scalar_lea.hbm %s1213_s12, 4096 }
  0x15   : > { %p1014_p0 = scmp.ne.s32.totalorder %s1213_s12, %s1013_s17  ;;  %p1015_p1 = pneg %p1217_p13 }
  0x16   : > { %s1018_s26 = scalar_lea.hbm %s1608_s0, 8192  ;;  %p1019_p4 = scmp.lt.u32.totalorder %s1213_s12, %s1608_s0 }
  0x17   : > { %p1016_p2 = pnand %p1015_p1, %p1014_p0  ;;  %p1020_p5 = scmp.lt.u32.totalorder %s1018_s26, %s1013_s17 }
  0x18   : > { %p1022_p8 = scmp.lt.u32.totalorder %s1013_s17, %s1213_s12 }
  0x19   : > { %p1017_p3 = pneg %p1016_p2  ;;  %p1021_p7 = por %p1020_p5, %p1019_p4 }
  0x1b   : > { %p1023_p10 = por %p1022_p8, %p1021_p7 }
  0x1d   : > { %p1024_p9 = pnand %p1023_p10, %p1017_p3 }
  0x1f   : > { %1027 = shalt.err (!%p1024_p9)
}
  0x20   : > { %s1028_s7 = scalar_lea.vmem %s1221_s14, 4096  ;;  %s1111_s9 = smov [#allocation2]  }
  0x21   : > { %p1029_p0 = scmp.ne.s32.totalorder %s1221_s14, %s1028_s7  ;;  %s1033_s10 = sshll.u32 %s1111_s9, 4  ;;  %s1034_s10 = int_to_ptr.vmem [resolvable:$false] %s1033_s10 }
  0x22   : > { %s1035_s11 = scalar_lea.vmem %s1034_s10, 8192  ;;  %p1036_p11 = scmp.lt.s32.totalorder %s1221_s14, %s1034_s10 }
  0x23   : > { %p1031_p2 = pnand %p1029_p0, %p1015_p1  ;;  %p1037_p4 = scmp.lt.s32.totalorder %s1035_s11, %s1028_s7 }
  0x25   : > { %p1032_p12 = pneg %p1031_p2  ;;  %p1038_p5 = por %p1037_p4, %p1036_p11 }
  0x27   : > { %p1039_p7 = pnand %p1038_p5, %p1032_p12 }
  0x29   : > { %1042 = shalt.err (!%p1039_p7)
}
  0x2a   : > { %s1112_s13 = smov 256   ;;  %s1113_s17 = smov 16  }
  0x2b   : > { %963 = dma.hbm_to_vmem [thread:$0]  (!%p1217_p13), %s1213_s12, 4096, %s1221_s14, %s1223_s16, %s1112_s13, %s1112_s13, %s1113_s17  }
  0x2c   : > { %p861_p9 = scmp.ge.s32.totalorder %s1109_s21, 1  ;;  %p206_p1 = scmp.lt.s32.totalorder %s1109_s21, 3 }
  0x2e   : > { %p207_p3 = pnand %p861_p9, %p206_p1 }
  0x2f   : > { %s1254_s23 = sand.u32 (!%p207_p3), 1, %s1101_s19  }
  0x30   : > { %210 = sbr.rel (%p207_p3) target bundleno = 857 (0x359), region = 40  ;;  %s862_s25 = sshll.u32 (!%p207_p3), %s1254_s23, 8 }
  0x31   : > { %s213_s26 = scalar_lea.sflag (!%p207_p3), [#allocation3], %s1254_s23  ;;  %s1260_s28 = scalar_lea.vmem (!%p207_p3), [#allocation2], %s862_s25 }
  0x37   : > { %1088 = dma.done.wait (%p1193_p6), %s213_s26, 4096  }
  0x38   : > { %1090 = vsyncadd (%p1193_p6), %s213_s26, 4294963200  ;;  %v1267_v0 = vld [vmem:[%s1260_s28] sm:$0xff]  ;;  %v1270_v1 = vld [vmem:[%s1260_s28 + $0x8] sm:$0xff]  ;;  %v1114_v38 = vmov 0.0|0.0   ;;  %vm1115_vm0 = vmmov 0   ;;  %vm383_vm1 = vcmask 130112  }
  0x39   : > { %v1273_v2 = vld [vmem:[%s1260_s28 + $0x20] sm:$0xff]  ;;  %v275_v3 = vadd.f32 %v1270_v1, %v1267_v0  ;;  %v1278_v4 = vld [vmem:[%s1260_s28 + $0x28] sm:$0xff]  ;;  %v1281_v5 = vld [vmem:[%s1260_s28 + $0x10] sm:$0xff]  ;;  %932 = vmatprep.subr.bf16.mxu0 %v1114_v38  ;;  %vm390_vm2 = vcmask 195712   ;;  %vm397_vm3 = vcmask 261312   ;;  %vm404_vm4 = vcmask 326912  }
  0x3a   : > { %v1284_v6 = vld [vmem:[%s1260_s28 + $0x18] sm:$0xff]  ;;  %v281_v7 = vadd.f32 %v1278_v4, %v1273_v2  ;;  %v1289_v8 = vld [vmem:[%s1260_s28 + $0x30] sm:$0xff]  ;;  %v1299_v12 = vld [vmem:[%s1260_s28 + $0x40] sm:$0xff]  ;;  %vm411_vm5 = vcmask 392512   ;;  %vm418_vm6 = vcmask 458112   ;;  %vm425_vm7 = vcmask 523712  }
  0x3b   : > { %v1292_v9 = vld [vmem:[%s1260_s28 + $0x38] sm:$0xff]  ;;  %276 = vadd.xlane.f32.xlu0 %v275_v3  ;;  %v278_v10 = vadd.f32 %v1284_v6, %v1281_v5  ;;  %v1302_v13 = vld [vmem:[%s1260_s28 + $0x48] sm:$0xff]  ;;  %v1305_v14 = vld [vmem:[%s1260_s28 + $0x50] sm:$0xff]  ;;  %vm432_vm8 = vcmask 589312   ;;  %vm439_vm9 = vcmask 654912   ;;  %vm446_vm10 = vcmask 720512  }
  0x3c   : > { %282 = vadd.xlane.f32.xlu1 %v281_v7  ;;  %v284_v11 = vadd.f32 %v1292_v9, %v1289_v8  ;;  %v1308_v15 = vld [vmem:[%s1260_s28 + $0x58] sm:$0xff]  ;;  %v287_v16 = vadd.f32 %v1302_v13, %v1299_v12  ;;  %v1315_v18 = vld [vmem:[%s1260_s28 + $0x60] sm:$0xff]  ;;  %v1318_v19 = vld [vmem:[%s1260_s28 + $0x68] sm:$0xff]  ;;  %vm453_vm11 = vcmask 786112   ;;  %vm460_vm12 = vcmask 851712   ;;  %s1495_s13 = scalar_lea.vmem [#allocation5], %s862_s25 }
  0x3d   : > { %v290_v17 = vadd.f32 %v1308_v15, %v1305_v14  ;;  %v1321_v20 = vld [vmem:[%s1260_s28 + $0x70] sm:$0xff]  ;;  %v1324_v21 = vld [vmem:[%s1260_s28 + $0x78] sm:$0xff]  ;;  %v293_v22 = vadd.f32 %v1318_v19, %v1315_v18  ;;  %v1331_v24 = vld [vmem:[%s1260_s28 + $0x80] sm:$0xff]  ;;  %vm467_vm13 = vcmask 917312   ;;  %vm474_vm14 = vcmask 982912   ;;  %s872_s25 = sshll.u32 %s1171_s22, 12 }
  0x3e   : > { %v296_v23 = vadd.f32 %v1324_v21, %v1321_v20  ;;  %v1334_v25 = vld [vmem:[%s1260_s28 + $0x88] sm:$0xff]  ;;  %v1337_v26 = vld [vmem:[%s1260_s28 + $0x90] sm:$0xff]  ;;  %v1340_v27 = vld [vmem:[%s1260_s28 + $0x98] sm:$0xff]  ;;  %vm481_vm15 = vcmask 1048512   ;;  %s782_s17 = sshll.u32 %s1495_s13, 4  ;;  %s1558_s29 = scalar_lea.hbm %s1613_s5, %s872_s25  ;;  %s1560_s17 = int_to_ptr.vmem [resolvable:$true] %s782_s17 }
  0x3f   : > { %279 = vadd.xlane.f32.xlu0 %v278_v10  ;;  %v299_v28 = vadd.f32 %v1334_v25, %v1331_v24  ;;  %v302_v29 = vadd.f32 %v1340_v27, %v1337_v26  ;;  %v1347_v30 = vld [vmem:[%s1260_s28 + $0xa0] sm:$0xff]  ;;  %v1350_v31 = vld [vmem:[%s1260_s28 + $0xa8] sm:$0xff]  ;;  %v1353_v32 = vld [vmem:[%s1260_s28 + $0xb0] sm:$0xff]  ;;  %s769_s22 = scalar_lea.sflag [#allocation4], %s1254_s23  ;;  %s1043_s12 = scalar_lea.vmem %s1560_s17, 4096 }
  0x40   : > { %285 = vadd.xlane.f32.xlu1 %v284_v11  ;;  %v1356_v33 = vld [vmem:[%s1260_s28 + $0xb8] sm:$0xff]  ;;  %v339_v34 = vld [vmem:[%s1609_s1] sm:$0xff]  ;;  %v340_v35 = vld [vmem:[%s1609_s1 + $0x8] sm:$0xff]  ;;  %v305_v37 = vadd.f32 %v1350_v31, %v1347_v30  ;;  %p1044_p6 = scmp.ne.s32.totalorder %s1560_s17, %s1043_s12  ;;  %p1620_p11 = scmp.ne.s32.totalorder %s1617_s30, 0 }
  0x41   : > { %v933_v36 = vpack.c.bf16 %v340_v35, %v339_v34  ;;  %v308_v39 = vadd.f32 %v1356_v33, %v1353_v32  ;;  %v1369_v40 = vld [vmem:[%s1260_s28 + $0xc0] sm:$0xff]  ;;  %v1372_v41 = vld [vmem:[%s1260_s28 + $0xc8] sm:$0xff]  ;;  %v1375_v42 = vld [vmem:[%s1260_s28 + $0xd0] sm:$0xff]  ;;  %v372_v34 = vlaneseq  ;;  %s1117_s14 = smov [#allocation5]  }
  0x42   : > { %v1378_v43 = vld [vmem:[%s1260_s28 + $0xd8] sm:$0xff]  ;;  %v341_v44 = vld [vmem:[%s1609_s1 + $0x10] sm:$0xff]  ;;  %v311_v47 = vadd.f32 %v1372_v41, %v1369_v40  ;;  %v1391_v49 = vld [vmem:[%s1260_s28 + $0xe0] sm:$0xff]  ;;  %p1045_p12 = pnand %p1044_p6, %p1620_p11  ;;  %s1047_s15 = sshll.u32 %s1117_s14, 4  ;;  %s1048_s15 = int_to_ptr.vmem [resolvable:$false] %s1047_s15 }
  0x43   : > { %288 = vadd.xlane.f32.xlu0 %v287_v16  ;;  %934 = vmatpush3.bf16.msra.mxu0 %v933_v36  ;;  %v342_v45 = vld [vmem:[%s1609_s1 + $0x18] sm:$0xff]  ;;  %v314_v48 = vadd.f32 %v1378_v43, %v1375_v42  ;;  %v1394_v50 = vld [vmem:[%s1260_s28 + $0xe8] sm:$0xff]  ;;  %v1397_v51 = vld [vmem:[%s1260_s28 + $0xf0] sm:$0xff]  ;;  %v1442_v35 = vand.u32 127, %v372_v34  ;;  %v1444_v36 = vshrl.u32 %v372_v34, 7  ;;  %s1049_s16 = scalar_lea.vmem %s1048_s15, 8192  ;;  %p1050_p8 = scmp.lt.s32.totalorder %s1560_s17, %s1048_s15 }
  0x44   : > { %291 = vadd.xlane.f32.xlu1 %v290_v17  ;;  %935 = vmatprep.subr.bf16.mxu0 %v1114_v38  ;;  %v936_v46 = vpack.c.bf16 %v342_v45, %v341_v44  ;;  %v1400_v52 = vld [vmem:[%s1260_s28 + $0xf8] sm:$0xff]  ;;  %v343_v53 = vld [vmem:[%s1609_s1 + $0x20] sm:$0xff]  ;;  %v344_v54 = vld [vmem:[%s1609_s1 + $0x28] sm:$0xff]  ;;  %v317_v56 = vadd.f32 %v1394_v50, %v1391_v49  ;;  %p1046_p13 = pneg %p1045_p12  ;;  %p1051_p10 = scmp.lt.s32.totalorder %s1049_s16, %s1043_s12 }
  0x45   : > { %v939_v55 = vpack.c.bf16 %v344_v54, %v343_v53  ;;  %v320_v57 = vadd.f32 %v1400_v52, %v1397_v51  ;;  %v345_v58 = vld [vmem:[%s1609_s1 + $0x30] sm:$0xff]  ;;  %v346_v59 = vld [vmem:[%s1609_s1 + $0x38] sm:$0xff]  ;;  %v347_v61 = vld [vmem:[%s1609_s1 + $0x40] sm:$0xff]  ;;  %v392_v44 = vadd.s32 4294967272, %v1442_v35  ;;  %v399_v53 = vadd.s32 4294967264, %v1442_v35 }
  0x46   : > { %v942_v60 = vpack.c.bf16 %v346_v59, %v345_v58  ;;  %v348_v62 = vld [vmem:[%s1609_s1 + $0x48] sm:$0xff]  ;;  %v349_v3 = vld [vmem:[%s1609_s1 + $0x50] sm:$0xff]  ;;  %v350_v7 = vld [vmem:[%s1609_s1 + $0x58] sm:$0xff]  ;;  %v406_v58 = vadd.s32 4294967256, %v1442_v35  ;;  %p1052_p0 = por %p1051_p10, %p1050_p8 }
  0x47   : > { %294 = vadd.xlane.f32.xlu0 %v293_v22  ;;  %937 = vmatpush3.bf16.msra.mxu0 %v936_v46  ;;  %v945_v63 = vpack.c.bf16 %v348_v62, %v347_v61  ;;  %v948_v10 = vpack.c.bf16 %v350_v7, %v349_v3  ;;  %v351_v11 = vld [vmem:[%s1609_s1 + $0x60] sm:$0xff]  ;;  %v352_v16 = vld [vmem:[%s1609_s1 + $0x68] sm:$0xff]  ;;  %v353_v22 = vld [vmem:[%s1609_s1 + $0x70] sm:$0xff]  ;;  %v376_v46 = vsub.s32 %v1442_v35, %v1444_v36  ;;  %v413_v7 = vadd.s32 4294967248, %v1442_v35 }
  0x48   : > { %297 = vadd.xlane.f32.xlu1 %v296_v23  ;;  %938 = vmatprep.subr.bf16.mxu0 %v1114_v38  ;;  %v951_v17 = vpack.c.bf16 %v352_v16, %v351_v11  ;;  %v354_v23 = vld [vmem:[%s1609_s1 + $0x78] sm:$0xff]  ;;  %v402_v3 = vsub.s32 %v399_v53, %v1444_v36  ;;  %v434_v53 = vadd.s32 4294967224, %v1442_v35  ;;  %p1053_p2 = pnand %p1052_p0, %p1046_p13 }
  0x4b   : > { %300 = vadd.xlane.f32.xlu0 %v299_v28  ;;  %940 = vmatpush3.bf16.msra.mxu0 %v939_v55  ;;  %v954_v28 = vpack.c.bf16 %v354_v23, %v353_v22  ;;  %v420_v22 = vadd.s32 4294967240, %v1442_v35 }
  0x4c   : > { %303 = vadd.xlane.f32.xlu1 %v302_v29  ;;  %941 = vmatprep.subr.bf16.mxu0 %v1114_v38  ;;  %v1116_v29 = vmov 0.0  }
  0x4d   : > { %924 = vmatprep.mubr.msk.f32.mxu0 %vm1115_vm0, %v1116_v29  ;;  %927 = vmatprep.subr.mxu1 %v1116_v29 }
  0x4e   : > { %929 = vmatprep.mubr.msk.f32.mxu1 %vm1115_vm0, %v1116_v29  ;;  %vm557_vm0 = vcmask 64512  }
  0x4f   : > { %306 = vadd.xlane.f32.xlu0 %v305_v37  ;;  %943 = vmatpush3.bf16.msra.mxu0 %v942_v60  ;;  %v378_v37 = vadd.s32 4294967288, %v1442_v35 }
  0x50   : > { %309 = vadd.xlane.f32.xlu1 %v308_v39  ;;  %944 = vmatprep.subr.bf16.mxu0 %v1114_v38  ;;  %v385_v39 = vadd.s32 4294967280, %v1442_v35 }
  0x52   : > { %v388_v54 = vsub.s32 %v385_v39, %v1444_v36 }
  0x53   : > { %312 = vadd.xlane.f32.xlu0 %v311_v47  ;;  %946 = vmatpush3.bf16.msra.mxu0 %v945_v63 }
  0x54   : > { %315 = vadd.xlane.f32.xlu1 %v314_v48  ;;  %947 = vmatprep.subr.bf16.mxu0 %v1114_v38  ;;  %v381_v48 = vsub.s32 %v378_v37, %v1444_v36 }
  0x57   : > { %318 = vadd.xlane.f32.xlu0 %v317_v56  ;;  %949 = vmatpush3.bf16.msra.mxu0 %v948_v10 }
  0x58   : > { %321 = vadd.xlane.f32.xlu1 %v320_v57  ;;  %950 = vmatprep.subr.bf16.mxu0 %v1114_v38  ;;  %v395_v57 = vsub.s32 %v392_v44, %v1444_v36  ;;  %v416_v44 = vsub.s32 %v413_v7, %v1444_v36  ;;  %v448_v7 = vadd.s32 4294967208, %v1442_v35 }
  0x5b   : > { %952 = vmatpush3.bf16.msra.mxu0 %v951_v17  ;;  %v409_v17 = vsub.s32 %v406_v58, %v1444_v36 }
  0x5c   : > { %953 = vmatprep.subr.bf16.mxu0 %v1114_v38 }
  0x5f   : > { %955 = vmatpush3.bf16.msra.mxu0 %v954_v28 }
  0xc8   : > { %v277_v38 = vpop.xlane.xlu0 %276 }
  0xc9   : > { %v283_v45 = vpop.xlane.xlu1 %282  ;;  %v323_v47 = vmul.f32 0.00390625, %v277_v38 }
  0xca   : > { %v325_v55 = vmul.f32 0.00390625, %v283_v45  ;;  %v427_v45 = vadd.s32 4294967232, %v1442_v35 }
  0xcb   : > { %v377_v62 = vrot.slane %v323_v47, %v376_v46 }
  0xcc   : > { %v280_v56 = vpop.xlane.xlu0 %279  ;;  %v389_v10 = vrot.slane %v325_v55, %v388_v54 }
  0xcd   : > { %v324_v59 = vmul.f32 0.00390625, %v280_v56  ;;  %v286_v60 = vpop.xlane.xlu1 %285 }
  0xce   : > { %v326_v61 = vmul.f32 0.00390625, %v286_v60  ;;  %v441_v60 = vadd.s32 4294967216, %v1442_v35 }
  0xcf   : > { %v382_v63 = vrot.slane %v324_v59, %v381_v48  ;;  %v423_v48 = vsub.s32 %v420_v22, %v1444_v36  ;;  %v430_v59 = vsub.s32 %v427_v45, %v1444_v36 }
  0xd0   : > { %v396_v11 = vrot.slane %v326_v61, %v395_v57  ;;  %v289_v16 = vpop.xlane.xlu0 %288 }
  0xd1   : > { %v384_v23 = vsel %vm383_vm1, %v382_v63, %v377_v62  ;;  %v327_v28 = vmul.f32 0.00390625, %v289_v16  ;;  %v292_v29 = vpop.xlane.xlu1 %291 }
  0xd2   : > { %v391_v34 = vsel %vm390_vm2, %v389_v10, %v384_v23  ;;  %v328_v37 = vmul.f32 0.00390625, %v292_v29  ;;  %v444_v23 = vsub.s32 %v441_v60, %v1444_v36 }
  0xd3   : > { %v398_v38 = vsel %vm397_vm3, %v396_v11, %v391_v34  ;;  %v403_v39 = vrot.slane %v327_v28, %v402_v3  ;;  %v437_v3 = vsub.s32 %v434_v53, %v1444_v36  ;;  %v455_v28 = vadd.s32 4294967200, %v1442_v35 }
  0xd4   : > { %v410_v46 = vrot.slane %v328_v37, %v409_v17  ;;  %v295_v47 = vpop.xlane.xlu0 %294 }
  0xd5   : > { %v405_v54 = vsel %vm404_vm4, %v403_v39, %v398_v38  ;;  %v329_v55 = vmul.f32 0.00390625, %v295_v47  ;;  %v298_v56 = vpop.xlane.xlu1 %297  ;;  %v451_v38 = vsub.s32 %v448_v7, %v1444_v36  ;;  %v462_v39 = vadd.s32 4294967192, %v1442_v35 }
  0xd6   : > { %v330_v57 = vmul.f32 0.00390625, %v298_v56  ;;  %v412_v61 = vsel %vm411_vm5, %v410_v46, %v405_v54  ;;  %v458_v53 = vsub.s32 %v455_v28, %v1444_v36  ;;  %v469_v54 = vadd.s32 4294967184, %v1442_v35 }
  0xd7   : > { %v417_v58 = vrot.slane %v329_v55, %v416_v44 }
  0xd8   : > { %v424_v62 = vrot.slane %v330_v57, %v423_v48  ;;  %v301_v63 = vpop.xlane.xlu0 %300  ;;  %v472_v7 = vsub.s32 %v469_v54, %v1444_v36  ;;  %v556_v54 = vld [vmem:[%s1612_s4] sm:$0x1] }
  0xd9   : > { %v419_v10 = vsel %vm418_vm6, %v417_v58, %v412_v61  ;;  %v331_v11 = vmul.f32 0.00390625, %v301_v63  ;;  %v304_v16 = vpop.xlane.xlu1 %303  ;;  %v465_v58 = vsub.s32 %v462_v39, %v1444_v36 }
  0xda   : > { %v332_v17 = vmul.f32 0.00390625, %v304_v16  ;;  %v426_v29 = vsel %vm425_vm7, %v424_v62, %v419_v10 }
  0xdb   : > { %v431_v22 = vrot.slane %v331_v11, %v430_v59  ;;  %v476_v59 = vadd.s32 4294967176, %v1442_v35 }
  0xdc   : > { %v438_v34 = vrot.slane %v332_v17, %v437_v3  ;;  %v307_v37 = vpop.xlane.xlu0 %306 }
  0xdd   : > { %v433_v44 = vsel %vm432_vm8, %v431_v22, %v426_v29  ;;  %v333_v45 = vmul.f32 0.00390625, %v307_v37  ;;  %v310_v46 = vpop.xlane.xlu1 %309  ;;  %v479_v17 = vsub.s32 %v476_v59, %v1444_v36 }
  0xde   : > { %v334_v47 = vmul.f32 0.00390625, %v310_v46  ;;  %v440_v55 = vsel %vm439_vm9, %v438_v34, %v433_v44  ;;  %v555_v44 = vld [vmem:[%s1611_s3] sm:$0xff] }
  0xdf   : > { %v445_v48 = vrot.slane %v333_v45, %v444_v23  ;;  %928 = vmatpush3.msra.mxu1 %v555_v44  ;;  %v355_v45 = vld [vmem:[%s1610_s2] sm:$0x1] }
  0xe0   : > { %v452_v56 = vrot.slane %v334_v47, %v451_v38  ;;  %v313_v57 = vpop.xlane.xlu0 %312 }
  0xe1   : > { %v447_v60 = vsel %vm446_vm10, %v445_v48, %v440_v55  ;;  %v335_v61 = vmul.f32 0.00390625, %v313_v57  ;;  %v316_v62 = vpop.xlane.xlu1 %315 }
  0xe2   : > { %v336_v63 = vmul.f32 0.00390625, %v316_v62  ;;  %v454_v10 = vsel %vm453_vm11, %v452_v56, %v447_v60 }
  0xe3   : > { %v459_v3 = vrot.slane %v335_v61, %v458_v53  ;;  %v639_v61 = vsub.s32 0, %v1444_v36 }
  0xe4   : > { %v466_v11 = vrot.slane %v336_v63, %v465_v58  ;;  %v319_v16 = vpop.xlane.xlu0 %318 }
  0xe5   : > { %v461_v22 = vsel %vm460_vm12, %v459_v3, %v454_v10  ;;  %v337_v23 = vmul.f32 0.00390625, %v319_v16  ;;  %v322_v28 = vpop.xlane.xlu1 %321 }
  0xe6   : > { %v338_v29 = vmul.f32 0.00390625, %v322_v28  ;;  %v468_v37 = vsel %vm467_vm13, %v466_v11, %v461_v22 }
  0xe7   : > { %v473_v35 = vrot.slane %v337_v23, %v472_v7 }
  0xe8   : > { %v480_v34 = vrot.slane %v338_v29, %v479_v17 }
  0xe9   : > { %v475_v38 = vsel %vm474_vm14, %v473_v35, %v468_v37 }
  0xea   : > { %v482_v39 = vsel %vm481_vm15, %v480_v34, %v475_v38 }
  0xeb   : > { %925 = vmatmul.mubr.f32.vlgmr.msra.gmra.mrb[0].mxu0 %v482_v39 }
 0x1be   : > { %v550_v46 = vpop.f32.mrb[0].mxu0 }
 0x1bf   : > { %v551_v47 = vadd.f32 %v550_v46, %v355_v45  ;;  %v926_v48 = vpop.f32.mrb[1].mxu0 }
 0x1c1   : > { %v554_v53 = vmax.f32 %v551_v47, 0.0 }
 0x1c3   : > { %930 = vmatmul.mubr.msk.f32.vlgmr.msra.gmra.mrb[0].mxu1 %vm557_vm0, %v554_v53 }
 0x296   : > { %v627_v55 = vpop.f32.mrb[0].mxu1 }
 0x297   : > { %v628_v56 = vadd.f32 %v627_v55, %v556_v54  ;;  %v931_v57 = vpop.f32.mrb[1].mxu1 }
 0x299   : > { %v865_v58 = vmul.f32 -1.442695, %v628_v56 }
 0x29b   : > { %1009 = vpow2.f32 %v865_v58 }
 0x2a5   : > { %v1010_v59 = vpop.eup %1009 }
 0x2a6   : > { %v634_v60 = vadd.f32 1.0, %v1010_v59 }
 0x2a8   : > { %1011 = vrcp.f32 %v634_v60 }
 0x2b2   : > { %v1012_v62 = vpop.eup %1011 }
 0x2b3   : > { %v640_v63 = vrot.slane %v1012_v62, %v639_v61 }
 0x2b5   : > { %646 = vbcast.lane.b32.xlu1 %v640_v63, 264  ;;  %642 = vbcast.lane.b32.xlu0 %v640_v63, 256 }
 0x2b9   : > { %650 = vbcast.lane.b32.xlu1 %v640_v63, 272  ;;  %658 = vbcast.lane.b32.xlu0 %v640_v63, 288 }
 0x2bd   : > { %654 = vbcast.lane.b32.xlu1 %v640_v63, 280  ;;  %666 = vbcast.lane.b32.xlu0 %v640_v63, 304 }
 0x2c1   : > { %662 = vbcast.lane.b32.xlu1 %v640_v63, 296  ;;  %674 = vbcast.lane.b32.xlu0 %v640_v63, 320 }
 0x2c5   : > { %670 = vbcast.lane.b32.xlu1 %v640_v63, 312  ;;  %682 = vbcast.lane.b32.xlu0 %v640_v63, 336 }
 0x2c9   : > { %678 = vbcast.lane.b32.xlu1 %v640_v63, 328  ;;  %690 = vbcast.lane.b32.xlu0 %v640_v63, 352 }
 0x2cd   : > { %686 = vbcast.lane.b32.xlu1 %v640_v63, 344  ;;  %698 = vbcast.lane.b32.xlu0 %v640_v63, 368 }
 0x2d1   : > { %694 = vbcast.lane.b32.xlu1 %v640_v63, 360 }
 0x2d5   : > { %702 = vbcast.lane.b32.xlu1 %v640_v63, 376 }
 0x327   : > { %v647_v36 = vpop.permute.xlu1 %646  ;;  %v643_v3 = vpop.permute.xlu0 %642 }
 0x328   : > { %v706_v7 = vmul.f32 %v647_v36, %v1281_v5  ;;  %v707_v10 = vmul.f32 %v647_v36, %v1284_v6  ;;  %v704_v11 = vmul.f32 %v643_v3, %v1267_v0  ;;  %v705_v16 = vmul.f32 %v643_v3, %v1270_v1 }
 0x32a   : > { %738 = vst [vmem:[%s1495_s13 + $0x10] sm:$0xff] %v706_v7  ;;  %739 = vst [vmem:[%s1495_s13 + $0x18] sm:$0xff] %v707_v10 }
 0x32b   : > { %736 = vst [vmem:[%s1495_s13] sm:$0xff] %v704_v11  ;;  %737 = vst [vmem:[%s1495_s13 + $0x8] sm:$0xff] %v705_v16  ;;  %v651_v5 = vpop.permute.xlu1 %650  ;;  %v659_v0 = vpop.permute.xlu0 %658 }
 0x32c   : > { %v708_v1 = vmul.f32 %v651_v5, %v1273_v2  ;;  %v709_v6 = vmul.f32 %v651_v5, %v1278_v4  ;;  %v712_v17 = vmul.f32 %v659_v0, %v1299_v12  ;;  %v713_v22 = vmul.f32 %v659_v0, %v1302_v13 }
 0x32e   : > { %740 = vst [vmem:[%s1495_s13 + $0x20] sm:$0xff] %v708_v1  ;;  %741 = vst [vmem:[%s1495_s13 + $0x28] sm:$0xff] %v709_v6 }
 0x32f   : > { %744 = vst [vmem:[%s1495_s13 + $0x40] sm:$0xff] %v712_v17  ;;  %745 = vst [vmem:[%s1495_s13 + $0x48] sm:$0xff] %v713_v22  ;;  %v655_v23 = vpop.permute.xlu1 %654  ;;  %v667_v28 = vpop.permute.xlu0 %666 }
 0x330   : > { %v710_v29 = vmul.f32 %v655_v23, %v1289_v8  ;;  %v711_v2 = vmul.f32 %v655_v23, %v1292_v9  ;;  %v716_v4 = vmul.f32 %v667_v28, %v1315_v18  ;;  %v717_v12 = vmul.f32 %v667_v28, %v1318_v19 }
 0x332   : > { %742 = vst [vmem:[%s1495_s13 + $0x30] sm:$0xff] %v710_v29  ;;  %743 = vst [vmem:[%s1495_s13 + $0x38] sm:$0xff] %v711_v2 }
 0x333   : > { %748 = vst [vmem:[%s1495_s13 + $0x60] sm:$0xff] %v716_v4  ;;  %749 = vst [vmem:[%s1495_s13 + $0x68] sm:$0xff] %v717_v12  ;;  %v663_v13 = vpop.permute.xlu1 %662  ;;  %v675_v35 = vpop.permute.xlu0 %674 }
 0x334   : > { %v714_v34 = vmul.f32 %v663_v13, %v1305_v14  ;;  %v715_v8 = vmul.f32 %v663_v13, %v1308_v15  ;;  %v720_v9 = vmul.f32 %v675_v35, %v1331_v24  ;;  %v721_v18 = vmul.f32 %v675_v35, %v1334_v25 }
 0x336   : > { %746 = vst [vmem:[%s1495_s13 + $0x50] sm:$0xff] %v714_v34  ;;  %747 = vst [vmem:[%s1495_s13 + $0x58] sm:$0xff] %v715_v8 }
 0x337   : > { %752 = vst [vmem:[%s1495_s13 + $0x80] sm:$0xff] %v720_v9  ;;  %753 = vst [vmem:[%s1495_s13 + $0x88] sm:$0xff] %v721_v18  ;;  %v671_v19 = vpop.permute.xlu1 %670  ;;  %v683_v37 = vpop.permute.xlu0 %682 }
 0x338   : > { %v718_v38 = vmul.f32 %v671_v19, %v1321_v20  ;;  %v719_v14 = vmul.f32 %v671_v19, %v1324_v21  ;;  %v724_v15 = vmul.f32 %v683_v37, %v1347_v30  ;;  %v725_v24 = vmul.f32 %v683_v37, %v1350_v31 }
 0x33a   : > { %750 = vst [vmem:[%s1495_s13 + $0x70] sm:$0xff] %v718_v38  ;;  %751 = vst [vmem:[%s1495_s13 + $0x78] sm:$0xff] %v719_v14 }
 0x33b   : > { %756 = vst [vmem:[%s1495_s13 + $0xa0] sm:$0xff] %v724_v15  ;;  %757 = vst [vmem:[%s1495_s13 + $0xa8] sm:$0xff] %v725_v24  ;;  %v679_v25 = vpop.permute.xlu1 %678  ;;  %v691_v39 = vpop.permute.xlu0 %690 }
 0x33c   : > { %v722_v44 = vmul.f32 %v679_v25, %v1337_v26  ;;  %v723_v20 = vmul.f32 %v679_v25, %v1340_v27  ;;  %v728_v21 = vmul.f32 %v691_v39, %v1369_v40  ;;  %v729_v30 = vmul.f32 %v691_v39, %v1372_v41 }
 0x33e   : > { %754 = vst [vmem:[%s1495_s13 + $0x90] sm:$0xff] %v722_v44  ;;  %755 = vst [vmem:[%s1495_s13 + $0x98] sm:$0xff] %v723_v20 }
 0x33f   : > { %760 = vst [vmem:[%s1495_s13 + $0xc0] sm:$0xff] %v728_v21  ;;  %761 = vst [vmem:[%s1495_s13 + $0xc8] sm:$0xff] %v729_v30  ;;  %v687_v31 = vpop.permute.xlu1 %686  ;;  %v699_v45 = vpop.permute.xlu0 %698 }
 0x340   : > { %v726_v26 = vmul.f32 %v687_v31, %v1353_v32  ;;  %v727_v46 = vmul.f32 %v687_v31, %v1356_v33  ;;  %v732_v27 = vmul.f32 %v699_v45, %v1391_v49  ;;  %v733_v40 = vmul.f32 %v699_v45, %v1394_v50 }
 0x342   : > { %758 = vst [vmem:[%s1495_s13 + $0xb0] sm:$0xff] %v726_v26  ;;  %759 = vst [vmem:[%s1495_s13 + $0xb8] sm:$0xff] %v727_v46 }
 0x343   : > { %764 = vst [vmem:[%s1495_s13 + $0xe0] sm:$0xff] %v732_v27  ;;  %765 = vst [vmem:[%s1495_s13 + $0xe8] sm:$0xff] %v733_v40  ;;  %v695_v41 = vpop.permute.xlu1 %694 }
 0x344   : > { %v730_v47 = vmul.f32 %v695_v41, %v1375_v42  ;;  %v731_v48 = vmul.f32 %v695_v41, %v1378_v43 }
 0x346   : > { %762 = vst [vmem:[%s1495_s13 + $0xd0] sm:$0xff] %v730_v47  ;;  %763 = vst [vmem:[%s1495_s13 + $0xd8] sm:$0xff] %v731_v48 }
 0x347   : > { %v703_v32 = vpop.permute.xlu1 %702 }
 0x348   : > { %v734_v33 = vmul.f32 %v703_v32, %v1397_v51  ;;  %v735_v42 = vmul.f32 %v703_v32, %v1400_v52 }
 0x34a   : > { %766 = vst [vmem:[%s1495_s13 + $0xf0] sm:$0xff] %v734_v33  ;;  %767 = vst [vmem:[%s1495_s13 + $0xf8] sm:$0xff] %v735_v42 }
 0x34b   : > { %1056 = shalt.err (!%p1053_p2)
}
 0x34c   : > { %s1057_s8 = scalar_lea.hbm %s1558_s29, 4096  ;;  %s1061_s10 = scalar_lea.hbm %s1613_s5, 8192 }
 0x34d   : > { %p1058_p4 = scmp.ne.s32.totalorder %s1558_s29, %s1057_s8  ;;  %p1062_p9 = scmp.lt.u32.totalorder %s1558_s29, %s1613_s5 }
 0x34e   : > { %p1063_p1 = scmp.lt.u32.totalorder %s1061_s10, %s1057_s8  ;;  %p1065_p6 = scmp.lt.u32.totalorder %s1057_s8, %s1558_s29 }
 0x34f   : > { %p1059_p5 = pnand %p1058_p4, %p1620_p11 }
 0x350   : > { %p1064_p3 = por %p1063_p1, %p1062_p9 }
 0x351   : > { %p1060_p7 = pneg %p1059_p5 }
 0x352   : > { %p1066_p12 = por %p1065_p6, %p1064_p3 }
 0x354   : > { %p1067_p13 = pnand %p1066_p12, %p1060_p7 }
 0x356   : > { %1070 = shalt.err (!%p1067_p13)
}
 0x357   : > { %s1118_s25 = smov 256   ;;  %s1119_s26 = smov 16  }
 0x358   : > { %958 = dma.vmem_to_hbm [thread:$0]  (%p1620_p11), %s1560_s17, 4096, %s1558_s29, %s769_s22, %s1118_s25, %s1118_s25, %s1119_s26  }
 0x359 PF: > { %s797_s28 = sand.u32 1, %s1097_s18   ;;  %p1621_p8 = scmp.ne.s32.totalorder %s1618_s6, 0 }
 0x35a   : > { %p1622_p10 = scmp.ge.s32.totalorder %s1109_s21, 2  ;;  %s798_s12 = scalar_lea.sflag [#allocation4], %s797_s28 }
 0x35c   : > { %p965_p0 = pnand %p1622_p10, %p1621_p8 }
 0x35e   : > { %1092 = dma.done.wait (!%p965_p0), %s798_s12, 4096  }
 0x35f   : > { %1094 = vsyncadd (!%p965_p0), %s798_s12, 4294963200  ;;  %p18_p2 = scmp.ge.s32.totalorder %s1175_s24, 4   ;;  %s1623_s18 = smov %s1101_s19 }
 0x360   : > { %s1624_s19 = smov %s1105_s20  ;;  %s1625_s20 = smov %s1187_s27 }
 0x361   : > { %s1626_s21 = smov %s1175_s24  ;;  %20 = sbr.rel (!%p18_p2) target bundleno = 5 (0x5), region = 85 }
 0x368   :  { %803 = vsyncpa [#allocation3], 1 }
 0x369   :  { %805 = vsyncpa [#allocation3 + $0x1], 1 }
 0x36a   :  { %806 = vsyncpa [#allocation4], 1 }
 0x36b   :  { %808 = vsyncpa [#allocation4 + $0x1], 1 }

</bundles_post_ra>
